<compile_context>
chip_gen: v7x
topology: tpu7x:2x2x1
jax: 0.10.0
libtpu: 0.0.40
codegen_flags: <defaults>
</compile_context>

<pallas_src>
import functools

import jax
import jax.numpy as jnp
from jax.experimental import pallas as pl
from jax.experimental.pallas import tpu as pltpu


def _round_up(x, m):
    return (x + m - 1) // m * m


def mlp_kernel(x_ref, w1_ref, b1_ref, w2_ref, b2_ref, w3_ref, b3_ref, o_ref):
    bf16 = jnp.bfloat16
    # fc1 + ReLU  (bf16 MXU inputs, f32 accumulation, f32 elementwise)
    h1 = jnp.dot(x_ref[...], w1_ref[...], preferred_element_type=jnp.float32)
    h1 = jnp.maximum(h1 + b1_ref[...], 0.0)
    # fc2 + ReLU
    h2 = jnp.dot(h1.astype(bf16), w2_ref[...], preferred_element_type=jnp.float32)
    h2 = jnp.maximum(h2 + b2_ref[...], 0.0)
    # out (no activation)
    out = jnp.dot(h2.astype(bf16), w3_ref[...], preferred_element_type=jnp.float32)
    o_ref[...] = (out + b3_ref[...]).astype(o_ref.dtype)


def _pad2(a, rows, cols, dtype):
    """Zero-pad a 2-D array to (rows, cols) and cast to dtype."""
    out = jnp.zeros((rows, cols), dtype)
    return out.at[: a.shape[0], : a.shape[1]].set(a.astype(dtype))


def prepare_params(w1, b1, w2, b2, w3, b3):
    """One-time padding / casting of the weights & biases (hoisted out of forward).

    Returns a tuple of device arrays:
      W1 (784, 256) bf16, b1 (1, 256) f32,
      W2 (256, 256) bf16, b2 (1, 256) f32,
      W3 (256, 128) bf16, b3 (1, 128) f32.
    """
    K = w1.shape[0]                      # 784 (left unpadded; block == full dim)
    H = _round_up(w1.shape[1], 128)      # 200 -> 256
    NP = _round_up(w3.shape[1], 128)     # 10  -> 128
    bf16 = jnp.bfloat16
    w1p = _pad2(w1, K, H, bf16)
    w2p = _pad2(w2, H, H, bf16)
    w3p = _pad2(w3, H, NP, bf16)
    b1p = _pad2(b1.reshape(1, -1), 1, H, jnp.float32)
    b2p = _pad2(b2.reshape(1, -1), 1, H, jnp.float32)
    b3p = _pad2(b3.reshape(1, -1), 1, NP, jnp.float32)
    return tuple(jax.device_put(p) for p in (w1p, b1p, w2p, b2p, w3p, b3p))


def _choose_tile_b(B, requested):
    """Pick a batch tile: multiple of 16 (bf16 sublanes), clamped for small B,
    and capped so the grid has >= 2 steps when the batch allows it (v7x 2-TC)."""
    b16 = _round_up(B, 16)
    t = min(_round_up(max(requested, 16), 16), b16)
    if b16 >= 32 and pl.cdiv(b16, t) < 2:
        t = _round_up(pl.cdiv(b16, 2), 16)
    return t


@functools.partial(jax.jit, static_argnames=("tile_b", "n_out"))
def mlp_forward(x, padded_params, *, tile_b=512, n_out=10):
    """x: (B, 1, 28, 28) or (B, 784) float32.  Returns (B, n_out) float32.

    Note: x is cast to bf16 before fc1 (bf16-in / f32-accumulate MXU math); this
    is an intentional precision tradeoff.
    """
    w1p, b1p, w2p, b2p, w3p, b3p = padded_params
    xf = x.reshape(x.shape[0], -1).astype(jnp.bfloat16)   # fuses under jit
    B, K = xf.shape                        # K = 784, unpadded
    H = w1p.shape[1]                       # 256
    NP = w3p.shape[1]                      # 128

    tb = _choose_tile_b(B, tile_b)
    BP = _round_up(B, tb)
    grid = (BP // tb,)
    if BP > B:                             # batch-only padding (cheap, fused)
        xf = jnp.pad(xf, ((0, BP - B), (0, 0)))

    # Advisory cost so XLA schedules the x producer around the custom call.
    flops = 2 * BP * (K * H + H * H + H * NP)
    bytes_accessed = (
        BP * K * 2                                   # x (bf16)
        + (K * H + H * H + H * NP) * 2               # weights (bf16)
        + (H + H + NP) * 4                           # biases (f32)
        + BP * NP * 4                                # output (f32)
    )
    cost = pl.CostEstimate(flops=flops, transcendentals=0,
                           bytes_accessed=bytes_accessed)

    const = lambda i: (0, 0)               # weights/biases resident across the grid
    out_padded = pl.pallas_call(
        mlp_kernel,
        out_shape=jax.ShapeDtypeStruct((BP, NP), jnp.float32),
        grid=grid,
        in_specs=[
            pl.BlockSpec((tb, K), lambda i: (i, 0)),   # x tile (pipelined; K = full dim)
            pl.BlockSpec((K, H), const),               # W1
            pl.BlockSpec((1, H), const),               # b1
            pl.BlockSpec((H, H), const),               # W2
            pl.BlockSpec((1, H), const),               # b2
            pl.BlockSpec((H, NP), const),              # W3
            pl.BlockSpec((1, NP), const),              # b3
        ],
        out_specs=pl.BlockSpec((tb, NP), lambda i: (i, 0)),
        compiler_params=pltpu.CompilerParams(
            dimension_semantics=("parallel",),
            # Default scoped VMEM is plenty up to tile_b ~2048; set
            # vmem_limit_bytes explicitly only if pushing past that on v5e.
        ),
        cost_estimate=cost,
    )(xf, w1p, b1p, w2p, b2p, w3p, b3p)

    return out_padded[:B, :n_out]


def init_params(key):
    """Deterministic PyTorch-nn.Linear-style init (uniform +/- 1/sqrt(fan_in))."""
    def linear(key, fan_in, fan_out):
        kw, kb = jax.random.split(key)
        bound = 1.0 / jnp.sqrt(fan_in)
        # stored as (in, out) so the kernel does x @ W
        w = jax.random.uniform(kw, (fan_in, fan_out), jnp.float32, -bound, bound)
        b = jax.random.uniform(kb, (1, fan_out), jnp.float32, -bound, bound)
        return w, b

    k1, k2, k3 = jax.random.split(key, 3)
    w1, b1 = linear(k1, 784, 200)
    w2, b2 = linear(k2, 200, 200)
    w3, b3 = linear(k3, 200, 10)
    return w1, b1, w2, b2, w3, b3


if __name__ == "__main__":
    key = jax.random.PRNGKey(0)
    kx, kp = jax.random.split(key)

    # MNIST-like input: batch=8, NCHW (8, 1, 28, 28) -> flattens to 784 features.
    B = 8
    x = jax.random.normal(kx, (B, 1, 28, 28), jnp.float32)
    raw_params = init_params(kp)

    # One-time padding/casting of the weights (hoisted out of the forward path).
    padded_params = prepare_params(*raw_params)

    out = mlp_forward(x, padded_params)
    out = jax.block_until_ready(out)
    assert out.shape == (B, 10)

    # Reference with the same bf16-input / f32-accumulate math as the kernel.
    xf = x.reshape(B, -1)
    w1, b1, w2, b2, w3, b3 = raw_params
    bf = jnp.bfloat16
    ref = jnp.dot(xf.astype(bf), w1.astype(bf), preferred_element_type=jnp.float32)
    ref = jnp.maximum(ref + b1, 0.0)
    ref = jnp.dot(ref.astype(bf), w2.astype(bf), preferred_element_type=jnp.float32)
    ref = jnp.maximum(ref + b2, 0.0)
    ref = jnp.dot(ref.astype(bf), w3.astype(bf), preferred_element_type=jnp.float32)
    ref = ref + b3
    assert jnp.allclose(out, ref, atol=1e-2, rtol=1e-2), \
        float(jnp.max(jnp.abs(out - ref)))

    # Sanity vs. full-f32 math (looser tolerance for bf16 rounding).
    ref32 = jnp.maximum(xf @ w1 + b1, 0.0)
    ref32 = jnp.maximum(ref32 @ w2 + b2, 0.0)
    ref32 = ref32 @ w3 + b3
    assert jnp.allclose(out, ref32, atol=5e-2, rtol=5e-2)

    print("KERNEL_OK")
</pallas_src>

<mosaic_0001>
module attributes {stable_mosaic.version = 11 : i64} {
  func.func @mlp_kernel(%arg0: i32, %arg1: memref<16x784xbf16, #tpu.memory_space<vmem>>, %arg2: memref<784x256xbf16, #tpu.memory_space<vmem>>, %arg3: memref<1x256xf32, #tpu.memory_space<vmem>>, %arg4: memref<256x256xbf16, #tpu.memory_space<vmem>>, %arg5: memref<1x256xf32, #tpu.memory_space<vmem>>, %arg6: memref<256x128xbf16, #tpu.memory_space<vmem>>, %arg7: memref<1x128xf32, #tpu.memory_space<vmem>>, %arg8: memref<16x128xf32, #tpu.memory_space<vmem>>) attributes {dimension_semantics = [#tpu.dimension_semantics<parallel>], iteration_bounds = array<i64: 1>, scalar_prefetch = 0 : i64, scratch_operands = 0 : i64, tpu.core_type = #tpu.core_type<tc>, window_params = [{transform_indices = @transform_0, window_bounds = array<i64: 16, 784>}, {pipeline_mode = #tpu.pipeline_mode<synchronous>, transform_indices = @transform_1, window_bounds = array<i64: 784, 256>}, {pipeline_mode = #tpu.pipeline_mode<synchronous>, transform_indices = @transform_2, window_bounds = array<i64: 1, 256>}, {pipeline_mode = #tpu.pipeline_mode<synchronous>, transform_indices = @transform_3, window_bounds = array<i64: 256, 256>}, {pipeline_mode = #tpu.pipeline_mode<synchronous>, transform_indices = @transform_4, window_bounds = array<i64: 1, 256>}, {pipeline_mode = #tpu.pipeline_mode<synchronous>, transform_indices = @transform_5, window_bounds = array<i64: 256, 128>}, {pipeline_mode = #tpu.pipeline_mode<synchronous>, transform_indices = @transform_6, window_bounds = array<i64: 1, 128>}, {transform_indices = @transform_7, window_bounds = array<i64: 16, 128>}]} {
    %c0 = arith.constant 0 : index
    %c0_0 = arith.constant 0 : index
    %0 = vector.load %arg1[%c0, %c0_0] : memref<16x784xbf16, #tpu.memory_space<vmem>>, vector<16x784xbf16>
    %c0_1 = arith.constant 0 : index
    %c0_2 = arith.constant 0 : index
    %1 = vector.load %arg2[%c0_1, %c0_2] : memref<784x256xbf16, #tpu.memory_space<vmem>>, vector<784x256xbf16>
    %cst = arith.constant dense<0.000000e+00> : vector<16x256xf32>
    %2 = tpu.matmul %0, %1, %cst {dimension_numbers = #tpu.dot_dimension_numbers<[1], [0], [0], [1], [0, 0, 1, 1], [], []>} : vector<16x784xbf16>, vector<784x256xbf16>, vector<16x256xf32> -> vector<16x256xf32>
    %c0_3 = arith.constant 0 : index
    %c0_4 = arith.constant 0 : index
    %3 = vector.load %arg3[%c0_3, %c0_4] : memref<1x256xf32, #tpu.memory_space<vmem>>, vector<1x256xf32>
    %4 = vector.broadcast %3 : vector<1x256xf32> to vector<16x256xf32>
    %5 = arith.addf %2, %4 : vector<16x256xf32>
    %cst_5 = arith.constant 0.000000e+00 : f32
    %6 = vector.broadcast %cst_5 : f32 to vector<16x256xf32>
    %7 = arith.maximumf %5, %6 : vector<16x256xf32>
    %8 = arith.truncf %7 : vector<16x256xf32> to vector<16x256xbf16>
    %c0_6 = arith.constant 0 : index
    %c0_7 = arith.constant 0 : index
    %9 = vector.load %arg4[%c0_6, %c0_7] : memref<256x256xbf16, #tpu.memory_space<vmem>>, vector<256x256xbf16>
    %cst_8 = arith.constant dense<0.000000e+00> : vector<16x256xf32>
    %10 = tpu.matmul %8, %9, %cst_8 {dimension_numbers = #tpu.dot_dimension_numbers<[1], [0], [0], [1], [0, 0, 1, 1], [], []>} : vector<16x256xbf16>, vector<256x256xbf16>, vector<16x256xf32> -> vector<16x256xf32>
    %c0_9 = arith.constant 0 : index
    %c0_10 = arith.constant 0 : index
    %11 = vector.load %arg5[%c0_9, %c0_10] : memref<1x256xf32, #tpu.memory_space<vmem>>, vector<1x256xf32>
    %12 = vector.broadcast %11 : vector<1x256xf32> to vector<16x256xf32>
    %13 = arith.addf %10, %12 : vector<16x256xf32>
    %cst_11 = arith.constant 0.000000e+00 : f32
    %14 = vector.broadcast %cst_11 : f32 to vector<16x256xf32>
    %15 = arith.maximumf %13, %14 : vector<16x256xf32>
    %16 = arith.truncf %15 : vector<16x256xf32> to vector<16x256xbf16>
    %c0_12 = arith.constant 0 : index
    %c0_13 = arith.constant 0 : index
    %17 = vector.load %arg6[%c0_12, %c0_13] : memref<256x128xbf16, #tpu.memory_space<vmem>>, vector<256x128xbf16>
    %cst_14 = arith.constant dense<0.000000e+00> : vector<16x128xf32>
    %18 = tpu.matmul %16, %17, %cst_14 {dimension_numbers = #tpu.dot_dimension_numbers<[1], [0], [0], [1], [0, 0, 1, 1], [], []>} : vector<16x256xbf16>, vector<256x128xbf16>, vector<16x128xf32> -> vector<16x128xf32>
    %c0_15 = arith.constant 0 : index
    %c0_16 = arith.constant 0 : index
    %19 = vector.load %arg7[%c0_15, %c0_16] : memref<1x128xf32, #tpu.memory_space<vmem>>, vector<1x128xf32>
    %20 = vector.broadcast %19 : vector<1x128xf32> to vector<16x128xf32>
    %21 = arith.addf %18, %20 : vector<16x128xf32>
    %c0_17 = arith.constant 0 : index
    %c0_18 = arith.constant 0 : index
    %22 = vector.load %arg8[%c0_17, %c0_18] : memref<16x128xf32, #tpu.memory_space<vmem>>, vector<16x128xf32>
    tpu.vector_store %arg8[%c0_17, %c0_18], %21 {strides = array<i32>} : memref<16x128xf32, #tpu.memory_space<vmem>>, vector<16x128xf32>,
    return
  }
  func.func @transform_0(%arg0: i32) -> (i32, i32) {
    %c0_i32 = arith.constant 0 : i32
    %c0_i32_0 = arith.constant 0 : i32
    return %arg0, %c0_i32 : i32, i32
  }
  func.func @transform_1(%arg0: i32) -> (i32, i32) {
    %c0_i32 = arith.constant 0 : i32
    %c0_i32_0 = arith.constant 0 : i32
    %c0_i32_1 = arith.constant 0 : i32
    return %c0_i32, %c0_i32_0 : i32, i32
  }
  func.func @transform_2(%arg0: i32) -> (i32, i32) {
    %c0_i32 = arith.constant 0 : i32
    %c0_i32_0 = arith.constant 0 : i32
    %c0_i32_1 = arith.constant 0 : i32
    return %c0_i32, %c0_i32_0 : i32, i32
  }
  func.func @transform_3(%arg0: i32) -> (i32, i32) {
    %c0_i32 = arith.constant 0 : i32
    %c0_i32_0 = arith.constant 0 : i32
    %c0_i32_1 = arith.constant 0 : i32
    return %c0_i32, %c0_i32_0 : i32, i32
  }
  func.func @transform_4(%arg0: i32) -> (i32, i32) {
    %c0_i32 = arith.constant 0 : i32
    %c0_i32_0 = arith.constant 0 : i32
    %c0_i32_1 = arith.constant 0 : i32
    return %c0_i32, %c0_i32_0 : i32, i32
  }
  func.func @transform_5(%arg0: i32) -> (i32, i32) {
    %c0_i32 = arith.constant 0 : i32
    %c0_i32_0 = arith.constant 0 : i32
    %c0_i32_1 = arith.constant 0 : i32
    return %c0_i32, %c0_i32_0 : i32, i32
  }
  func.func @transform_6(%arg0: i32) -> (i32, i32) {
    %c0_i32 = arith.constant 0 : i32
    %c0_i32_0 = arith.constant 0 : i32
    %c0_i32_1 = arith.constant 0 : i32
    return %c0_i32, %c0_i32_0 : i32, i32
  }
  func.func @transform_7(%arg0: i32) -> (i32, i32) {
    %c0_i32 = arith.constant 0 : i32
    %c0_i32_0 = arith.constant 0 : i32
    return %arg0, %c0_i32 : i32, i32
  }
}

</mosaic_0001>

<bundles_post_ra>
// kernel: mlp_forward.1
= control target key start
LH: loop header
LB: loop body
LE: loop exit
PB: predicated region body
PF: predicated region fallthrough
CT: control target
= control target key end

     0   :  { %12 = vsyncpa [#allocation3], 0  ;;  %s1744_s24 = smov [#allocation2]   ;;  %s1980_s0 = inlined_call_operand.vmem [shape: bf16[16,784], index: 0, kind: input, shape index: {}]   ;;  %s1981_s1 = inlined_call_operand.hbm [shape: bf16[784,256], index: 1, kind: input, shape index: {}]   ;;  %s1982_s2 = inlined_call_operand.vmem [shape: f32[1,256], index: 2, kind: input, shape index: {}]   ;;  %s1983_s3 = inlined_call_operand.vmem [shape: bf16[256,256], index: 3, kind: input, shape index: {}]   ;;  %s1984_s4 = inlined_call_operand.vmem [shape: f32[1,256], index: 4, kind: input, shape index: {}]   ;;  %s1985_s5 = inlined_call_operand.vmem [shape: bf16[256,128], index: 5, kind: input, shape index: {}]   ;;  %s1986_s6 = inlined_call_operand.vmem [shape: f32[1,128], index: 6, kind: input, shape index: {}]   ;;  %s1987_s7 = inlined_call_operand.vmem [shape: f32[16,128], index: 7, kind: output, shape index: {}]  }
   0x1   :  { %s20_s25 = sshll.u32 %s1744_s24, 4  ;;  %s1720_s28 = scalar_lea.hbm %s1981_s1, 12544  ;;  %s21_s25 = int_to_ptr.vmem [resolvable:$true] %s20_s25 }
   0x2   :  { %p1721_p0 = scmp.ne.s32.totalorder %s1981_s1, %s1720_s28  ;;  %p1724_p1 = scmp.lt.u32.totalorder %s1720_s28, %s1981_s1 }
   0x4   :  { %p1726_p2 = pnand %p1724_p1, %p1721_p0 }
   0x6   :  { %1729 = shalt.err (!%p1726_p2)
}
   0x7   :  { %s1730_s10 = scalar_lea.vmem %s21_s25, 12544  ;;  %p1735_p4 = scmp.lt.s32.totalorder %s21_s25, %s21_s25 }
   0x8   :  { %p1731_p3 = scmp.ne.s32.totalorder %s21_s25, %s1730_s10  ;;  %p1736_p5 = scmp.lt.s32.totalorder %s1730_s10, %s1730_s10 }
   0xa   :  { %p1737_p6 = por %p1736_p5, %p1735_p4 }
   0xc   :  { %p1738_p7 = pnand %p1737_p6, %p1731_p3 }
   0xe   :  { %1741 = shalt.err (!%p1738_p7)
}
   0xf   :  { %s1745_s11 = smov 128   ;;  %s1746_s12 = smov 8  }
  0x10   :  { %26 = dma.hbm_to_vmem [thread:$0]  %s1981_s1, 12544, %s21_s25, [#allocation3], %s1745_s11, %s1745_s11, %s1746_s12  }
  0x11   :  { %1742 = dma.done.wait [#allocation3], 12544  }
  0x12   :  { %1743 = vsyncadd [#allocation3], 4294954752  ;;  %v1499_v0 = vld [vmem:[#allocation2 + $0x104] ss:$8 sps:$4 sm:$0xff]   ;;  %v1501_v1 = vld [vmem:[#allocation2 + $0x100] ss:$8 sps:$4 sm:$0xff]  }
  0x13   :  { %731 = vmatprep.subr.bf16.mxu0 %v1499_v0  ;;  %v1502_v2 = vld [vmem:[#allocation2 + $0x114] ss:$8 sps:$4 sm:$0xff]   ;;  %v1504_v3 = vld [vmem:[#allocation2 + $0x110] ss:$8 sps:$4 sm:$0xff]   ;;  %v1505_v4 = vld [vmem:[#allocation2 + $0x124] ss:$8 sps:$4 sm:$0xff]  }
  0x14   :  { %732 = vmatpush1.bf16.msra.mxu0 %v1501_v1  ;;  %v1507_v5 = vld [vmem:[#allocation2 + $0x120] ss:$8 sps:$4 sm:$0xff]   ;;  %v1508_v6 = vld [vmem:[#allocation2 + $0x134] ss:$8 sps:$4 sm:$0xff]   ;;  %v1510_v7 = vld [vmem:[#allocation2 + $0x130] ss:$8 sps:$4 sm:$0xff]  }
  0x15   :  { %733 = vmatprep.subr.bf16.mxu0 %v1502_v2  ;;  %v1511_v8 = vld [vmem:[#allocation2 + $0x144] ss:$8 sps:$4 sm:$0xff]   ;;  %v1513_v9 = vld [vmem:[#allocation2 + $0x140] ss:$8 sps:$4 sm:$0xff]   ;;  %v1514_v10 = vld [vmem:[#allocation2 + $0x154] ss:$8 sps:$4 sm:$0xff]  }
  0x16   :  { %v1516_v11 = vld [vmem:[#allocation2 + $0x150] ss:$8 sps:$4 sm:$0xff]   ;;  %v1517_v12 = vld [vmem:[#allocation2 + $0x164] ss:$8 sps:$4 sm:$0xff]   ;;  %v1519_v14 = vld [vmem:[#allocation2 + $0x160] ss:$8 sps:$4 sm:$0xff]  }
  0x17   :  { %v1549_v13 = vld [vmem:[%s1980_s0 + $0xc] ss:$28 sps:$4 sm:$0xff]   ;;  %v1520_v15 = vld [vmem:[#allocation2 + $0x174] ss:$8 sps:$4 sm:$0xff]   ;;  %v1522_v17 = vld [vmem:[#allocation2 + $0x170] ss:$8 sps:$4 sm:$0xff]  }
  0x18   :  { %734 = vmatpush1.bf16.msra.mxu0 %v1504_v3  ;;  %763 = vmatprep.mubr.bf16.mxu0 %v1549_v13  ;;  %v1556_v16 = vld [vmem:[#allocation2 + $0x4] ss:$8 sps:$4 sm:$0xff]   ;;  %v1561_v19 = vld [vmem:[#allocation2] ss:$8 sps:$4 sm:$0xff]   ;;  %v1562_v20 = vld [vmem:[#allocation2 + $0x14] ss:$8 sps:$4 sm:$0xff]  }
  0x19   :  { %735 = vmatprep.subr.bf16.mxu0 %v1505_v4  ;;  %v1523_v18 = vld [vmem:[#allocation2 + $0x184] ss:$8 sps:$4 sm:$0xff]   ;;  %688 = vmatprep.subr.bf16.mxu1 %v1556_v16  ;;  %v1525_v21 = vld [vmem:[#allocation2 + $0x180] ss:$8 sps:$4 sm:$0xff]   ;;  %v1567_v22 = vld [vmem:[#allocation2 + $0x10] ss:$8 sps:$4 sm:$0xff]  }
  0x1a   :  { %689 = vmatpush1.bf16.msra.mxu1 %v1561_v19  ;;  %v1568_v23 = vld [vmem:[#allocation2 + $0x24] ss:$8 sps:$4 sm:$0xff]   ;;  %v1526_v24 = vld [vmem:[#allocation2 + $0x194] ss:$8 sps:$4 sm:$0xff]   ;;  %v1573_v25 = vld [vmem:[#allocation2 + $0x20] ss:$8 sps:$4 sm:$0xff]  }
  0x1b   :  { %690 = vmatprep.subr.bf16.mxu1 %v1562_v20  ;;  %v1574_v26 = vld [vmem:[#allocation2 + $0x34] ss:$8 sps:$4 sm:$0xff]   ;;  %v1528_v27 = vld [vmem:[#allocation2 + $0x190] ss:$8 sps:$4 sm:$0xff]   ;;  %v1529_v28 = vld [vmem:[#allocation2 + $0x1a4] ss:$8 sps:$4 sm:$0xff]  }
  0x1c   :  { %736 = vmatpush1.bf16.msra.mxu0 %v1507_v5  ;;  %v1579_v29 = vld [vmem:[#allocation2 + $0x30] ss:$8 sps:$4 sm:$0xff]   ;;  %v1580_v30 = vld [vmem:[#allocation2 + $0x44] ss:$8 sps:$4 sm:$0xff]   ;;  %v1531_v31 = vld [vmem:[#allocation2 + $0x1a0] ss:$8 sps:$4 sm:$0xff]  }
  0x1d   :  { %737 = vmatprep.subr.bf16.mxu0 %v1508_v6  ;;  %v1532_v32 = vld [vmem:[#allocation2 + $0x1b4] ss:$8 sps:$4 sm:$0xff]   ;;  %v1585_v33 = vld [vmem:[#allocation2 + $0x40] ss:$8 sps:$4 sm:$0xff]   ;;  %v1534_v35 = vld [vmem:[#allocation2 + $0x1b0] ss:$8 sps:$4 sm:$0xff]  }
  0x1e   :  { %691 = vmatpush1.bf16.msra.mxu1 %v1567_v22  ;;  %v1586_v34 = vld [vmem:[#allocation2 + $0x54] ss:$8 sps:$4 sm:$0xff]   ;;  %v1535_v36 = vld [vmem:[#allocation2 + $0x1c4] ss:$8 sps:$4 sm:$0xff]   ;;  %v1591_v37 = vld [vmem:[#allocation2 + $0x50] ss:$8 sps:$4 sm:$0xff]  }
  0x1f   :  { %692 = vmatprep.subr.bf16.mxu1 %v1568_v23  ;;  %v1592_v38 = vld [vmem:[#allocation2 + $0x64] ss:$8 sps:$4 sm:$0xff]   ;;  %v1537_v39 = vld [vmem:[#allocation2 + $0x1c0] ss:$8 sps:$4 sm:$0xff]   ;;  %v1538_v40 = vld [vmem:[#allocation2 + $0x1d4] ss:$8 sps:$4 sm:$0xff]  }
  0x20   :  { %738 = vmatpush1.bf16.msra.mxu0 %v1510_v7  ;;  %v1597_v41 = vld [vmem:[#allocation2 + $0x60] ss:$8 sps:$4 sm:$0xff]   ;;  %v1598_v42 = vld [vmem:[#allocation2 + $0x74] ss:$8 sps:$4 sm:$0xff]   ;;  %v1540_v43 = vld [vmem:[#allocation2 + $0x1d0] ss:$8 sps:$4 sm:$0xff]  }
  0x21   :  { %739 = vmatprep.subr.bf16.mxu0 %v1511_v8  ;;  %v1541_v44 = vld [vmem:[#allocation2 + $0x1e4] ss:$8 sps:$4 sm:$0xff]   ;;  %v1603_v45 = vld [vmem:[#allocation2 + $0x70] ss:$8 sps:$4 sm:$0xff]   ;;  %v1543_v47 = vld [vmem:[#allocation2 + $0x1e0] ss:$8 sps:$4 sm:$0xff]  }
  0x22   :  { %693 = vmatpush1.bf16.msra.mxu1 %v1573_v25  ;;  %v1604_v46 = vld [vmem:[#allocation2 + $0x84] ss:$8 sps:$4 sm:$0xff]   ;;  %v1544_v48 = vld [vmem:[#allocation2 + $0x1f4] ss:$8 sps:$4 sm:$0xff]   ;;  %v1609_v49 = vld [vmem:[#allocation2 + $0x80] ss:$8 sps:$4 sm:$0xff]  }
  0x23   :  { %694 = vmatprep.subr.bf16.mxu1 %v1574_v26  ;;  %v1610_v50 = vld [vmem:[#allocation2 + $0x94] ss:$8 sps:$4 sm:$0xff]   ;;  %v1546_v51 = vld [vmem:[#allocation2 + $0x1f0] ss:$8 sps:$4 sm:$0xff]   ;;  %v1552_v52 = vld [vmem:[#allocation2 + $0x204] ss:$8 sps:$4 sm:$0xff]  }
  0x24   :  { %740 = vmatpush1.bf16.msra.mxu0 %v1513_v9  ;;  %v1615_v53 = vld [vmem:[#allocation2 + $0x90] ss:$8 sps:$4 sm:$0xff]   ;;  %v1547_v54 = vld [vmem:[%s1980_s0 + $0x8] ss:$28 sps:$4 sm:$0xff]   ;;  %v1555_v58 = vld [vmem:[#allocation2 + $0x214] ss:$8 sps:$4 sm:$0xff]  }
  0x25   :  { %741 = vmatprep.subr.bf16.mxu0 %v1514_v10  ;;  %v1616_v55 = vld [vmem:[#allocation2 + $0xa4] ss:$8 sps:$4 sm:$0xff]   ;;  %v1550_v56 = vld [vmem:[#allocation2 + $0x200] ss:$8 sps:$4 sm:$0xff]   ;;  %v1642_v57 = vld [vmem:[%s1980_s0 + $0x14] ss:$28 sps:$4 sm:$0xff]  }
  0x26   :  { %695 = vmatpush1.bf16.msra.mxu1 %v1579_v29  ;;  %v1621_v59 = vld [vmem:[#allocation2 + $0xa0] ss:$8 sps:$4 sm:$0xff]   ;;  %v1622_v60 = vld [vmem:[#allocation2 + $0xb4] ss:$8 sps:$4 sm:$0xff]   ;;  %v1553_v61 = vld [vmem:[#allocation2 + $0x210] ss:$8 sps:$4 sm:$0xff]  }
  0x27   :  { %696 = vmatprep.subr.bf16.mxu1 %v1580_v30  ;;  %v1560_v62 = vld [vmem:[#allocation2 + $0x224] ss:$8 sps:$4 sm:$0xff]   ;;  %v1627_v63 = vld [vmem:[#allocation2 + $0xb0] ss:$8 sps:$4 sm:$0xff]   ;;  %v1558_v2 = vld [vmem:[#allocation2 + $0x220] ss:$8 sps:$4 sm:$0xff]  }
  0x28   :  { %742 = vmatpush1.bf16.msra.mxu0 %v1516_v11  ;;  %v1654_v0 = vld [vmem:[%s1980_s0 + $0x4] ss:$28 sps:$4 sm:$0xff]   ;;  %v1566_v3 = vld [vmem:[#allocation2 + $0x234] ss:$8 sps:$4 sm:$0xff]   ;;  %v1564_v6 = vld [vmem:[#allocation2 + $0x230] ss:$8 sps:$4 sm:$0xff]  }
  0x29   :  { %743 = vmatprep.subr.bf16.mxu0 %v1517_v12  ;;  %v1628_v1 = vld [vmem:[#allocation2 + $0xc4] ss:$8 sps:$4 sm:$0xff]   ;;  %720 = vmatprep.mubr.bf16.mxu1 %v1654_v0  ;;  %v1633_v4 = vld [vmem:[#allocation2 + $0xc0] ss:$8 sps:$4 sm:$0xff]   ;;  %v1634_v5 = vld [vmem:[#allocation2 + $0xd4] ss:$8 sps:$4 sm:$0xff]  }
  0x2a   :  { %697 = vmatpush1.bf16.msra.mxu1 %v1585_v33  ;;  %v1572_v7 = vld [vmem:[#allocation2 + $0x244] ss:$8 sps:$4 sm:$0xff]   ;;  %v1639_v8 = vld [vmem:[#allocation2 + $0xd0] ss:$8 sps:$4 sm:$0xff]   ;;  %v1570_v10 = vld [vmem:[#allocation2 + $0x240] ss:$8 sps:$4 sm:$0xff]  }
  0x2b   :  { %698 = vmatprep.subr.bf16.mxu1 %v1586_v34  ;;  %v1643_v9 = vld [vmem:[#allocation2 + $0xe4] ss:$8 sps:$4 sm:$0xff]   ;;  %v1578_v11 = vld [vmem:[#allocation2 + $0x254] ss:$8 sps:$4 sm:$0xff]   ;;  %v1648_v12 = vld [vmem:[#allocation2 + $0xe0] ss:$8 sps:$4 sm:$0xff]  }
  0x2c   :  { %744 = vmatpush1.bf16.msra.mxu0 %v1519_v14  ;;  %v1649_v13 = vld [vmem:[#allocation2 + $0xf4] ss:$8 sps:$4 sm:$0xff]   ;;  %v1576_v14 = vld [vmem:[#allocation2 + $0x250] ss:$8 sps:$4 sm:$0xff]   ;;  %v1582_v16 = vld [vmem:[#allocation2 + $0x260] ss:$8 sps:$4 sm:$0xff]  }
  0x2d   :  { %745 = vmatprep.subr.bf16.mxu0 %v1520_v15  ;;  %v1584_v15 = vld [vmem:[#allocation2 + $0x264] ss:$8 sps:$4 sm:$0xff]   ;;  %v1590_v19 = vld [vmem:[#allocation2 + $0x274] ss:$8 sps:$4 sm:$0xff]   ;;  %v1588_v23 = vld [vmem:[#allocation2 + $0x270] ss:$8 sps:$4 sm:$0xff]  }
  0x2e   :  { %699 = vmatpush1.bf16.msra.mxu1 %v1591_v37  ;;  %v1652_v20 = vld [vmem:[%s1980_s0] ss:$28 sps:$4 sm:$0xff]   ;;  %v1659_v25 = vld [vmem:[%s1983_s3 + $0x10] ss:$8 sps:$4 sm:$0xff]   ;;  %v1664_v26 = vld [vmem:[%s1983_s3 + $0x24] ss:$8 sps:$4 sm:$0xff]  }
  0x2f   :  { %700 = vmatprep.subr.bf16.mxu1 %v1592_v38  ;;  %v1661_v22 = vld [vmem:[%s1983_s3 + $0x14] ss:$8 sps:$4 sm:$0xff]   ;;  %v1662_v29 = vld [vmem:[%s1983_s3 + $0x20] ss:$8 sps:$4 sm:$0xff]   ;;  %v1665_v33 = vld [vmem:[%s1983_s3 + $0x30] ss:$8 sps:$4 sm:$0xff]  }
  0x30   :  { %746 = vmatpush1.bf16.msra.mxu0 %v1522_v17  ;;  %v1651_v17 = vld [vmem:[#allocation2 + $0xf0] ss:$8 sps:$4 sm:$0xff]   ;;  %v1667_v30 = vld [vmem:[%s1983_s3 + $0x34] ss:$8 sps:$4 sm:$0xff]   ;;  %v1670_v34 = vld [vmem:[%s1983_s3 + $0x44] ss:$8 sps:$4 sm:$0xff]  }
  0x31   :  { %747 = vmatprep.subr.bf16.mxu0 %v1523_v18  ;;  %v1658_v18 = vld [vmem:[%s1983_s3 + $0x4] ss:$8 sps:$4 sm:$0xff]   ;;  %v1668_v37 = vld [vmem:[%s1983_s3 + $0x40] ss:$8 sps:$4 sm:$0xff]   ;;  %v1673_v38 = vld [vmem:[%s1983_s3 + $0x54] ss:$8 sps:$4 sm:$0xff]  }
  0x32   :  { %701 = vmatpush1.bf16.msra.mxu1 %v1597_v41  ;;  %v1671_v41 = vld [vmem:[%s1983_s3 + $0x50] ss:$8 sps:$4 sm:$0xff]   ;;  %vm684_vm0 = vcmask 130048  }
  0x33   :  { %702 = vmatprep.subr.bf16.mxu1 %v1598_v42  ;;  %v1676_v42 = vld [vmem:[%s1983_s3 + $0x64] ss:$8 sps:$4 sm:$0xff]   ;;  %v1689_v0 = vld [vmem:[%s1983_s3 + $0xb0] ss:$8 sps:$4 sm:$0xff]  }
  0x34   :  { %748 = vmatpush1.bf16.msra.mxu0 %v1525_v21  ;;  %v1656_v21 = vld [vmem:[%s1983_s3] ss:$8 sps:$4 sm:$0xff]  }
  0x35   :  { %749 = vmatprep.subr.bf16.mxu0 %v1526_v24  ;;  %v1596_v24 = vld [vmem:[#allocation2 + $0x284] ss:$8 sps:$4 sm:$0xff]  }
  0x36   :  { %703 = vmatpush1.bf16.msra.mxu1 %v1603_v45  ;;  %v1674_v45 = vld [vmem:[%s1983_s3 + $0x60] ss:$8 sps:$4 sm:$0xff]  }
  0x37   :  { %704 = vmatprep.subr.bf16.mxu1 %v1604_v46  ;;  %v1679_v46 = vld [vmem:[%s1983_s3 + $0x74] ss:$8 sps:$4 sm:$0xff]  }
  0x38   :  { %750 = vmatpush1.bf16.msra.mxu0 %v1528_v27  ;;  %v1594_v27 = vld [vmem:[#allocation2 + $0x280] ss:$8 sps:$4 sm:$0xff]  }
  0x39   :  { %751 = vmatprep.subr.bf16.mxu0 %v1529_v28  ;;  %v1602_v28 = vld [vmem:[#allocation2 + $0x294] ss:$8 sps:$4 sm:$0xff]  }
  0x3a   :  { %705 = vmatpush1.bf16.msra.mxu1 %v1609_v49  ;;  %v1677_v49 = vld [vmem:[%s1983_s3 + $0x70] ss:$8 sps:$4 sm:$0xff]  }
  0x3b   :  { %706 = vmatprep.subr.bf16.mxu1 %v1610_v50  ;;  %v1682_v50 = vld [vmem:[%s1983_s3 + $0x84] ss:$8 sps:$4 sm:$0xff]  }
  0x3c   :  { %752 = vmatpush1.bf16.msra.mxu0 %v1531_v31  ;;  %v1600_v31 = vld [vmem:[#allocation2 + $0x290] ss:$8 sps:$4 sm:$0xff]  }
  0x3d   :  { %753 = vmatprep.subr.bf16.mxu0 %v1532_v32  ;;  %v1608_v32 = vld [vmem:[#allocation2 + $0x2a4] ss:$8 sps:$4 sm:$0xff]  }
  0x3e   :  { %707 = vmatpush1.bf16.msra.mxu1 %v1615_v53  ;;  %v1680_v53 = vld [vmem:[%s1983_s3 + $0x80] ss:$8 sps:$4 sm:$0xff]  }
  0x3f   :  { %708 = vmatprep.subr.bf16.mxu1 %v1616_v55  ;;  %v1636_v55 = vld [vmem:[#allocation2 + $0x2f0] ss:$8 sps:$4 sm:$0xff]  }
  0x40   :  { %754 = vmatpush1.bf16.msra.mxu0 %v1534_v35  ;;  %v1606_v35 = vld [vmem:[#allocation2 + $0x2a0] ss:$8 sps:$4 sm:$0xff]  }
  0x41   :  { %755 = vmatprep.subr.bf16.mxu0 %v1535_v36  ;;  %v1614_v36 = vld [vmem:[#allocation2 + $0x2b4] ss:$8 sps:$4 sm:$0xff]  }
  0x42   :  { %709 = vmatpush1.bf16.msra.mxu1 %v1621_v59  ;;  %v1688_v59 = vld [vmem:[%s1983_s3 + $0xa4] ss:$8 sps:$4 sm:$0xff]  }
  0x43   :  { %710 = vmatprep.subr.bf16.mxu1 %v1622_v60  ;;  %v1645_v60 = vld [vmem:[#allocation2 + $0x300] ss:$8 sps:$4 sm:$0xff]  }
  0x44   :  { %756 = vmatpush1.bf16.msra.mxu0 %v1537_v39  ;;  %v1612_v39 = vld [vmem:[#allocation2 + $0x2b0] ss:$8 sps:$4 sm:$0xff]  }
  0x45   :  { %757 = vmatprep.subr.bf16.mxu0 %v1538_v40  ;;  %v1620_v40 = vld [vmem:[#allocation2 + $0x2c4] ss:$8 sps:$4 sm:$0xff]  }
  0x46   :  { %711 = vmatpush1.bf16.msra.mxu1 %v1627_v63  ;;  %v1747_v63 = vmov 0  }
  0x47   :  { %712 = vmatprep.subr.bf16.mxu1 %v1628_v1  ;;  %v1694_v1 = vld [vmem:[%s1983_s3 + $0xc4] ss:$8 sps:$4 sm:$0xff]  }
  0x48   :  { %758 = vmatpush1.bf16.msra.mxu0 %v1540_v43  ;;  %v1618_v43 = vld [vmem:[#allocation2 + $0x2c0] ss:$8 sps:$4 sm:$0xff]  }
  0x49   :  { %759 = vmatprep.subr.bf16.mxu0 %v1541_v44  ;;  %v1626_v44 = vld [vmem:[#allocation2 + $0x2d4] ss:$8 sps:$4 sm:$0xff]  }
  0x4a   :  { %713 = vmatpush1.bf16.msra.mxu1 %v1633_v4  ;;  %v1695_v4 = vld [vmem:[%s1983_s3 + $0xd0] ss:$8 sps:$4 sm:$0xff]  }
  0x4b   :  { %714 = vmatprep.subr.bf16.mxu1 %v1634_v5  ;;  %v1697_v5 = vld [vmem:[%s1983_s3 + $0xd4] ss:$8 sps:$4 sm:$0xff]  }
  0x4c   :  { %760 = vmatpush1.bf16.msra.mxu0 %v1543_v47  ;;  %v1624_v47 = vld [vmem:[#allocation2 + $0x2d0] ss:$8 sps:$4 sm:$0xff]  }
  0x4d   :  { %761 = vmatprep.subr.bf16.mxu0 %v1544_v48  ;;  %v1632_v48 = vld [vmem:[#allocation2 + $0x2e4] ss:$8 sps:$4 sm:$0xff]  }
  0x4e   :  { %715 = vmatpush1.bf16.msra.mxu1 %v1639_v8  ;;  %v1703_v8 = vld [vmem:[%s1983_s3 + $0xf4] ss:$8 sps:$4 sm:$0xff]  }
  0x4f   :  { %716 = vmatprep.subr.bf16.mxu1 %v1643_v9  ;;  %v1701_v9 = vld [vmem:[%s1983_s3 + $0xf0] ss:$8 sps:$4 sm:$0xff]  }
  0x50   :  { %762 = vmatpush1.bf16.msra.mxu0 %v1546_v51  ;;  %v1630_v51 = vld [vmem:[#allocation2 + $0x2e0] ss:$8 sps:$4 sm:$0xff]  }
  0x51   :  { %774 = vmatprep.subr.bf16.mxu0 %v1552_v52  ;;  %v1638_v52 = vld [vmem:[#allocation2 + $0x2f4] ss:$8 sps:$4 sm:$0xff]  }
  0x52   :  { %717 = vmatpush1.bf16.msra.mxu1 %v1648_v12 }
  0x53   :  { %764 = vmatmul.mubr.bf16.vlgmr.msra.gmra.mrb[0].mxu0 %v1547_v54  ;;  %718 = vmatprep.subr.bf16.mxu1 %v1649_v13  ;;  %v1685_v54 = vld [vmem:[%s1983_s3 + $0x94] ss:$8 sps:$4 sm:$0xff]  }
  0x54   :  { %775 = vmatpush1.bf16.msra.mxu0 %v1550_v56  ;;  %806 = vmatprep.mubr.bf16.mxu0 %v1642_v57  ;;  %v1647_v56 = vld [vmem:[#allocation2 + $0x304] ss:$8 sps:$4 sm:$0xff]   ;;  %v1683_v57 = vld [vmem:[%s1983_s3 + $0x90] ss:$8 sps:$4 sm:$0xff]  }
  0x55   :  { %776 = vmatprep.subr.bf16.mxu0 %v1555_v58  ;;  %v1640_v58 = vld [vmem:[%s1980_s0 + $0x10] ss:$28 sps:$4 sm:$0xff]  }
  0x56   :  { %719 = vmatpush1.bf16.msra.mxu1 %v1651_v17 }
  0x57   :  { %1070 = vmatprep.subr.bf16.mxu1 %v1658_v18  ;;  %v147_v18 = vld [vmem:[%s1982_s2] sm:$0x3] }
  0x58   :  { %777 = vmatpush1.bf16.msra.mxu0 %v1553_v61  ;;  %v1686_v61 = vld [vmem:[%s1983_s3 + $0xa0] ss:$8 sps:$4 sm:$0xff]  }
  0x59   :  { %778 = vmatprep.subr.bf16.mxu0 %v1560_v62  ;;  %721 = vmatmul.mubr.bf16.vlgmr.msra.gmra.mrb[0].mxu1 %v1652_v20  ;;  %v1691_v62 = vld [vmem:[%s1983_s3 + $0xb4] ss:$8 sps:$4 sm:$0xff]  }
  0x5a   :  { %1071 = vmatpush1.bf16.msra.mxu1 %v1656_v21 }
  0x5b   :  { %1072 = vmatprep.subr.bf16.mxu1 %v1661_v22 }
  0x5c   :  { %779 = vmatpush1.bf16.msra.mxu0 %v1558_v2  ;;  %v1692_v2 = vld [vmem:[%s1983_s3 + $0xc0] ss:$8 sps:$4 sm:$0xff]  }
  0x5d   :  { %780 = vmatprep.subr.bf16.mxu0 %v1566_v3  ;;  %v1655_v3 = vld [vmem:[%s1980_s0 + $0x18] ss:$28 sps:$4 sm:$0xff]  }
  0x5e   :  { %1073 = vmatpush1.bf16.msra.mxu1 %v1659_v25 }
  0x5f   :  { %1074 = vmatprep.subr.bf16.mxu1 %v1664_v26 }
  0x60   :  { %781 = vmatpush1.bf16.msra.mxu0 %v1564_v6  ;;  %v1700_v6 = vld [vmem:[%s1983_s3 + $0xe4] ss:$8 sps:$4 sm:$0xff]  }
  0x61   :  { %782 = vmatprep.subr.bf16.mxu0 %v1572_v7  ;;  %v1698_v7 = vld [vmem:[%s1983_s3 + $0xe0] ss:$8 sps:$4 sm:$0xff]  }
  0x62   :  { %1075 = vmatpush1.bf16.msra.mxu1 %v1662_v29 }
  0x63   :  { %1076 = vmatprep.subr.bf16.mxu1 %v1667_v30 }
  0x64   :  { %783 = vmatpush1.bf16.msra.mxu0 %v1570_v10  ;;  %v1704_v10 = vld [vmem:[%s1985_s5 + $0x40] sm:$0xff]  }
  0x65   :  { %784 = vmatprep.subr.bf16.mxu0 %v1578_v11 }
  0x66   :  { %1077 = vmatpush1.bf16.msra.mxu1 %v1665_v33 }
  0x67   :  { %1078 = vmatprep.subr.bf16.mxu1 %v1670_v34 }
  0x68   :  { %785 = vmatpush1.bf16.msra.mxu0 %v1576_v14 }
  0x69   :  { %786 = vmatprep.subr.bf16.mxu0 %v1584_v15  ;;  %v149_v15 = vlaneseq }
  0x6a   :  { %1079 = vmatpush1.bf16.msra.mxu1 %v1668_v37 }
  0x6b   :  { %1080 = vmatprep.subr.bf16.mxu1 %v1673_v38 }
  0x6c   :  { %787 = vmatpush1.bf16.msra.mxu0 %v1582_v16  ;;  %v150_v16 = vshrl.u32 %v149_v15, 7 }
  0x6d   :  { %788 = vmatprep.subr.bf16.mxu0 %v1590_v19 }
  0x6e   :  { %1081 = vmatpush1.bf16.msra.mxu1 %v1671_v41  ;;  %v151_v17 = vsub.s32 0, %v150_v16  ;;  %v155_v19 = vsub.s32 1, %v150_v16  ;;  %v1706_v41 = vld [vmem:[%s1985_s5 + $0x48] sm:$0xff]  }
  0x6f   :  { %1082 = vmatprep.subr.bf16.mxu1 %v1676_v42  ;;  %v1707_v42 = vld [vmem:[%s1985_s5 + $0x8] sm:$0xff]  }
  0x70   :  { %789 = vmatpush1.bf16.msra.mxu0 %v1588_v23  ;;  %v152_v20 = vrot.slane %v147_v18, %v151_v17  ;;  %v156_v21 = vrot.slane %v147_v18, %v155_v19 }
  0x71   :  { %790 = vmatprep.subr.bf16.mxu0 %v1596_v24 }
  0x72   :  { %1083 = vmatpush1.bf16.msra.mxu1 %v1674_v45  ;;  %v1710_v45 = vld [vmem:[%s1985_s5 + $0x58] sm:$0xff]  }
  0x73   :  { %1084 = vmatprep.subr.bf16.mxu1 %v1679_v46  ;;  %v1711_v46 = vld [vmem:[%s1985_s5 + $0x18] sm:$0xff]  }
  0x74   :  { %791 = vmatpush1.bf16.msra.mxu0 %v1594_v27 }
  0x75   :  { %792 = vmatprep.subr.bf16.mxu0 %v1602_v28 }
  0x76   :  { %1085 = vmatpush1.bf16.msra.mxu1 %v1677_v49  ;;  %v1714_v49 = vld [vmem:[%s1985_s5 + $0x68] sm:$0xff]  }
  0x77   :  { %1086 = vmatprep.subr.bf16.mxu1 %v1682_v50  ;;  %v1715_v50 = vld [vmem:[%s1985_s5 + $0x28] sm:$0xff]  }
  0x78   :  { %793 = vmatpush1.bf16.msra.mxu0 %v1600_v31 }
  0x79   :  { %794 = vmatprep.subr.bf16.mxu0 %v1608_v32 }
  0x7a   :  { %1087 = vmatpush1.bf16.msra.mxu1 %v1680_v53  ;;  %v1718_v53 = vld [vmem:[%s1985_s5 + $0x78] sm:$0xff]  }
  0x7b   :  { %1088 = vmatprep.subr.bf16.mxu1 %v1685_v54  ;;  %v1719_v54 = vld [vmem:[%s1985_s5 + $0x38] sm:$0xff]  }
  0x7c   :  { %795 = vmatpush1.bf16.msra.mxu0 %v1606_v35 }
  0x7d   :  { %796 = vmatprep.subr.bf16.mxu0 %v1614_v36 }
  0x7e   :  { %1089 = vmatpush1.bf16.msra.mxu1 %v1683_v57 }
  0x7f   :  { %1090 = vmatprep.subr.bf16.mxu1 %v1688_v59 }
  0x80   :  { %797 = vmatpush1.bf16.msra.mxu0 %v1612_v39 }
  0x81   :  { %798 = vmatprep.subr.bf16.mxu0 %v1620_v40  ;;  %v1705_v40 = vld [vmem:[%s1985_s5] sm:$0xff]  }
  0x82   :  { %1091 = vmatpush1.bf16.msra.mxu1 %v1686_v61 }
  0x83   :  { %1092 = vmatprep.subr.bf16.mxu1 %v1691_v62 }
  0x84   :  { %799 = vmatpush1.bf16.msra.mxu0 %v1618_v43  ;;  %v1708_v43 = vld [vmem:[%s1985_s5 + $0x50] sm:$0xff]  }
  0x85   :  { %800 = vmatprep.subr.bf16.mxu0 %v1626_v44  ;;  %v1709_v44 = vld [vmem:[%s1985_s5 + $0x10] sm:$0xff]  }
  0x86   :  { %1093 = vmatpush1.bf16.msra.mxu1 %v1689_v0 }
  0x87   :  { %1094 = vmatprep.subr.bf16.mxu1 %v1694_v1 }
  0x88   :  { %801 = vmatpush1.bf16.msra.mxu0 %v1624_v47  ;;  %v1712_v47 = vld [vmem:[%s1985_s5 + $0x60] sm:$0xff]  }
  0x89   :  { %802 = vmatprep.subr.bf16.mxu0 %v1632_v48  ;;  %v1713_v48 = vld [vmem:[%s1985_s5 + $0x20] sm:$0xff]  }
  0x8a   :  { %1095 = vmatpush1.bf16.msra.mxu1 %v1692_v2 }
  0x8b   :  { %1096 = vmatprep.subr.bf16.mxu1 %v1697_v5 }
  0x8c   :  { %803 = vmatpush1.bf16.msra.mxu0 %v1630_v51  ;;  %v1716_v51 = vld [vmem:[%s1985_s5 + $0x70] sm:$0xff]  }
  0x8d   :  { %804 = vmatprep.subr.bf16.mxu0 %v1638_v52  ;;  %v1717_v52 = vld [vmem:[%s1985_s5 + $0x30] sm:$0xff]  }
  0x8e   :  { %1097 = vmatpush1.bf16.msra.mxu1 %v1695_v4 }
  0x8f   :  { %1098 = vmatprep.subr.bf16.mxu1 %v1700_v6 }
  0x90   :  { %805 = vmatpush1.bf16.msra.mxu0 %v1636_v55  ;;  %v898_v55 = vld [vmem:[%s1984_s4] sm:$0x3] }
  0x91   :  { %817 = vmatprep.subr.bf16.mxu0 %v1647_v56  ;;  %v903_v56 = vrot.slane %v898_v55, %v151_v17  ;;  %v907_v57 = vrot.slane %v898_v55, %v155_v19 }
  0x92   :  { %1099 = vmatpush1.bf16.msra.mxu1 %v1698_v7 }
  0x93   :  { %807 = vmatmul.mubr.bf16.vlgmr.msra.gmra.mrb[0].mxu0 %v1640_v58  ;;  %1100 = vmatprep.subr.bf16.mxu1 %v1703_v8 }
  0x94   :  { %818 = vmatpush1.bf16.msra.mxu0 %v1645_v60  ;;  %849 = vmatprep.mubr.bf16.mxu0 %v1747_v63 }
  0x96   :  { %1101 = vmatpush1.bf16.msra.mxu1 %v1701_v9  ;;  %v1440_v9 = vld [vmem:[%s1986_s6] ss:$0 sm:$0xff] }
  0x97   :  { %1457 = vmatprep.subr.bf16.mxu1 %v1704_v10 }
  0x9f   :  { %1407 = vmatmul.mubr.msk.bf16.vlgmr.msra.gmra.mrb[0].mxu0 %vm684_vm0, %v1655_v3 }
 0x12c   :  { %v722_v11 = vpop.f32.mrb[0].mxu1 }
 0x12d   :  { %v724_v12 = vpop.f32.mrb[1].mxu1  ;;  %v723_v22 = vadd.f32 %v722_v11, %v152_v20 }
 0x12e   :  { %v726_v13 = vpop.f32.mrb[2].mxu1  ;;  %v725_v23 = vadd.f32 %v724_v12, %v156_v21 }
 0x12f   :  { %v728_v14 = vpop.f32.mrb[3].mxu1  ;;  %v727_v25 = vadd.f32 %v726_v13, %v152_v20 }
 0x130   :  { %v729_v28 = vadd.f32 %v728_v14, %v156_v21 }
 0x172   :  { %v851_v24 = vpop.f32.mrb[0].mxu0 }
 0x173   :  { %v1480_v26 = vadd.f32 %v851_v24, %v723_v22  ;;  %v853_v27 = vpop.f32.mrb[1].mxu0 }
 0x174   :  { %v1482_v29 = vadd.f32 %v853_v27, %v725_v23  ;;  %v855_v30 = vpop.f32.mrb[2].mxu0 }
 0x175   :  { %v1484_v31 = vadd.f32 %v855_v30, %v727_v25  ;;  %v857_v32 = vpop.f32.mrb[3].mxu0  ;;  %v860_v34 = vmax.f32 %v1480_v26, 0.0 }
 0x176   :  { %v1486_v33 = vadd.f32 %v857_v32, %v729_v28  ;;  %v861_v36 = vmax.f32 %v1482_v29, 0.0 }
 0x177   :  { %v862_v35 = vmax.f32 %v1484_v31, 0.0 }
 0x178   :  { %v863_v37 = vmax.f32 %v1486_v33, 0.0 }
 0x179   :  { %v864_v38 = vpack.c.bf16 %v862_v35, %v860_v34 }
 0x17a   :  { %v865_v39 = vpack.c.bf16 %v863_v37, %v861_v36 }
 0x17c   :  { %1102 = vmatprep.mubr.bf16.mxu1 %v865_v39 }
 0x17d   :  { %1103 = vmatmul.mubr.bf16.vlgmr.msra.gmra.mrb[4].mxu1 %v864_v38 }
 0x17e   :  { %1458 = vmatpush3.bf16.msra.mxu1 %v1705_v40 }
 0x17f   :  { %1459 = vmatprep.subr.bf16.mxu1 %v1706_v41 }
 0x182   :  { %1460 = vmatpush3.bf16.msra.mxu1 %v1707_v42 }
 0x183   :  { %1461 = vmatprep.subr.bf16.mxu1 %v1708_v43 }
 0x186   :  { %1462 = vmatpush3.bf16.msra.mxu1 %v1709_v44 }
 0x187   :  { %1463 = vmatprep.subr.bf16.mxu1 %v1710_v45 }
 0x18a   :  { %1464 = vmatpush3.bf16.msra.mxu1 %v1711_v46 }
 0x18b   :  { %1465 = vmatprep.subr.bf16.mxu1 %v1712_v47 }
 0x18e   :  { %1466 = vmatpush3.bf16.msra.mxu1 %v1713_v48 }
 0x18f   :  { %1467 = vmatprep.subr.bf16.mxu1 %v1714_v49 }
 0x192   :  { %1468 = vmatpush3.bf16.msra.mxu1 %v1715_v50 }
 0x193   :  { %1469 = vmatprep.subr.bf16.mxu1 %v1716_v51 }
 0x196   :  { %1470 = vmatpush3.bf16.msra.mxu1 %v1717_v52 }
 0x197   :  { %1471 = vmatprep.subr.bf16.mxu1 %v1718_v53 }
 0x19a   :  { %1472 = vmatpush3.bf16.msra.mxu1 %v1719_v54 }
 0x250   :  { %v1104_v58 = vpop.f32.mrb[4].mxu1 }
 0x251   :  { %v1105_v59 = vadd.f32 %v1104_v58, %v903_v56  ;;  %v1106_v60 = vpop.f32.mrb[5].mxu1 }
 0x252   :  { %v1107_v61 = vadd.f32 %v1106_v60, %v907_v57  ;;  %v1108_v62 = vpop.f32.mrb[6].mxu1 }
 0x253   :  { %v1109_v63 = vadd.f32 %v1108_v62, %v903_v56  ;;  %v1110_v0 = vpop.f32.mrb[7].mxu1  ;;  %v1113_v2 = vmax.f32 %v1105_v59, 0.0 }
 0x254   :  { %v1111_v1 = vadd.f32 %v1110_v0, %v907_v57  ;;  %v1114_v4 = vmax.f32 %v1107_v61, 0.0 }
 0x255   :  { %v1115_v3 = vmax.f32 %v1109_v63, 0.0 }
 0x256   :  { %v1116_v5 = vmax.f32 %v1111_v1, 0.0 }
 0x257   :  { %v1117_v6 = vpack.c.bf16 %v1115_v3, %v1113_v2 }
 0x258   :  { %v1118_v7 = vpack.c.bf16 %v1116_v5, %v1114_v4 }
 0x25a   :  { %1286 = vmatprep.mubr.bf16.mxu1 %v1118_v7 }
 0x25b   :  { %1287 = vmatmul.mubr.bf16.vlgmr.msra.gmra.mrb[8].mxu1 %v1117_v6 }
 0x32e   :  { %v1473_v8 = vpop.f32.mrb[8].mxu1 }
 0x32f   :  { %v1474_v10 = vpop.f32.mrb[9].mxu1 }
 0x330   :  { %v1475_v11 = vadd.f32 %v1474_v10, %v1473_v8  ;;  %v1476_v12 = vpop.f32.mrb[10].mxu1 }
 0x331   :  { %v1477_v13 = vpop.f32.mrb[11].mxu1 }
 0x332   :  { %v1289_v14 = vadd.f32 %v1475_v11, %v1440_v9  ;;  %v1478_v15 = vadd.f32 %v1477_v13, %v1476_v12 }
 0x334   :  { %1295 = vst [vmem:[%s1987_s7] sm:$0xff] %v1289_v14  ;;  %v1292_v16 = vadd.f32 %v1478_v15, %v1440_v9 }
 0x336   :  { %1296 = vst [vmem:[%s1987_s7 + $0x8] sm:$0xff] %v1292_v16 }
 0x337   :  { %1301 = vsyncpa [#allocation3], 1 }

</bundles_post_ra>
